<compile_context>
chip_gen: v7x
topology: tpu7x:2x2x1
jax: 0.10.0
libtpu: 0.0.40
codegen_flags: <defaults>
</compile_context>

<pallas_src>
import jax
import jax.numpy as jnp
from jax.experimental import pallas as pl
from jax.experimental.pallas import tpu as pltpu

BN_EPS = 1e-5


def _icon_fc_kernel(x_ref, w12_ref, b12_ref, w3p_ref, b3p_ref, fused_ref):
    # x is read in its native dtype (f32) and cast to bf16 in-register: no
    # separate host-side cast pass over x, half the MXU input width.
    xb = x_ref[...].astype(jnp.bfloat16)
    f = jnp.dot(xb, w12_ref[...],
                preferred_element_type=jnp.float32) + b12_ref[...]
    f = jnp.maximum(f, jnp.float32(0.0))                       # ReLU -> feature
    # Head matmul against the zero-padded W3 (c_out x head_w); lanes [:n_cls]
    # are the logits, the rest are exact zeros.  MXU is idle, this is free.
    head = jnp.dot(f, w3p_ref[...],
                   preferred_element_type=jnp.float32) + b3p_ref[...]
    # One lane-dense (tm, 128) store: [feature | logits | 0-pad].
    fused_ref[...] = jnp.concatenate([f, head], axis=-1).astype(fused_ref.dtype)


def _fold_params(params):
    """Fold eval-mode BN into Linear1, then fold Linear1 @ Linear2."""
    s = params["gamma"] * jax.lax.rsqrt(params["running_var"] + BN_EPS)
    w1p = s[:, None] * params["w1"]
    b1p = params["b1"] + (params["beta"] - params["running_mean"] * s) @ params["w1"]
    w12 = w1p @ params["w2"]                       # (in, out)
    b12 = b1p @ params["w2"] + params["b2"]        # (out,)
    return w12, b12


def _round_up(x, m):
    return ((x + m - 1) // m) * m


def icon_embedding_fc_forward(x, params, *, tile_m=4096, out_dtype=jnp.float32,
                              return_fused=False):
    """x: (N, in_channels). Returns (logits, feature) (or the fused buffer)."""
    n, c_in = x.shape
    c_out = params["w2"].shape[1]
    n_cls = params["w3"].shape[1]

    # ---- host-side folding + dtype prep -----------------------------------
    w12, b12 = _fold_params(params)
    w12 = w12.astype(jnp.bfloat16)                 # MXU-native, halves weight bytes
    b12 = b12.reshape(1, c_out).astype(jnp.float32)

    # Zero-pad the tiny head so feature|logits packs into a 128-lane block.
    fused_width = max(128, _round_up(c_out + n_cls, 128))
    head_w = fused_width - c_out
    w3p = jnp.zeros((c_out, head_w), jnp.float32).at[:, :n_cls].set(
        params["w3"].astype(jnp.float32))
    b3p = jnp.zeros((1, head_w), jnp.float32).at[0, :n_cls].set(
        params["b3"].astype(jnp.float32))

    # ---- batch tiling -------------------------------------------------------
    # Multiple of 8 sublanes; aim for >=2 grid steps so v7x's 2 TCs both work.
    tm = min(int(tile_m), _round_up(pl.cdiv(n, 2), 8))
    tm = max(8, _round_up(tm, 8))
    grid = (pl.cdiv(n, tm),)                       # non-dividing last block is OK

    resident = lambda i: (0, 0)                    # params stay VMEM-resident

    fused = pl.pallas_call(
        _icon_fc_kernel,
        out_shape=jax.ShapeDtypeStruct((n, fused_width), out_dtype),
        grid=grid,
        in_specs=[
            pl.BlockSpec((tm, c_in), lambda i: (i, 0)),
            pl.BlockSpec(w12.shape, resident),
            pl.BlockSpec(b12.shape, resident),
            pl.BlockSpec(w3p.shape, resident),
            pl.BlockSpec(b3p.shape, resident),
        ],
        out_specs=pl.BlockSpec((tm, fused_width), lambda i: (i, 0)),
        compiler_params=pltpu.CompilerParams(
            dimension_semantics=("parallel",),
            # ~7 MiB used at tm=4096; 32 MiB keeps headroom on v7x (64 MiB/TC)
            # and deliberately exceeds v5e's 16 MiB default scoped limit.
            vmem_limit_bytes=32 * 1024 * 1024,
        ),
    )(x, w12, b12, w3p, b3p)

    if return_fused:
        return fused                                # lanes [0:c_out]=feature, [c_out:c_out+n_cls]=logits
    feature = fused[:, :c_out]
    logits = fused[:, c_out:c_out + n_cls]
    return logits, feature


def init_params(key, in_channels=96, hidden_channels=128, out_channels=64,
                final_class=4):
    ks = jax.random.split(key, 6)

    def linear_init(kw, kb, fan_in, fan_out):
        bound = 1.0 / jnp.sqrt(fan_in)
        w = jax.random.uniform(kw, (fan_in, fan_out), jnp.float32, -bound, bound)
        b = jax.random.uniform(kb, (fan_out,), jnp.float32, -bound, bound)
        return w, b

    w1, b1 = linear_init(ks[0], ks[1], in_channels, hidden_channels)
    w2, b2 = linear_init(ks[2], ks[3], hidden_channels, out_channels)
    w3, b3 = linear_init(ks[4], ks[5], out_channels, final_class)

    return {
        "gamma": jnp.ones((in_channels,), jnp.float32),
        "beta": jnp.zeros((in_channels,), jnp.float32),
        "running_mean": jnp.zeros((in_channels,), jnp.float32),
        "running_var": jnp.ones((in_channels,), jnp.float32),
        "w1": w1, "b1": b1,
        "w2": w2, "b2": b2,
        "w3": w3, "b3": b3,
    }


def _reference_module(x, p):
    """Pure-f32 reference of the PyTorch module in eval mode (unfolded)."""
    inv_std = jax.lax.rsqrt(p["running_var"] + BN_EPS)
    xn = (x - p["running_mean"]) * inv_std * p["gamma"] + p["beta"]
    h = xn @ p["w1"] + p["b1"]                     # Dropout = identity (eval)
    f = jnp.maximum(h @ p["w2"] + p["b2"], 0.0)
    logits = f @ p["w3"] + p["b3"]
    return logits, f


def _reference_folded_bf16(x, p):
    """Mirrors the kernel's exact math: folded weights, bf16 operands, f32 acc."""
    w12, b12 = _fold_params(p)
    xb = x.astype(jnp.bfloat16).astype(jnp.float32)
    w12b = w12.astype(jnp.bfloat16).astype(jnp.float32)
    f = jnp.maximum(xb @ w12b + b12, 0.0)
    logits = f @ p["w3"] + p["b3"]
    return logits, f


if __name__ == "__main__":
    key = jax.random.PRNGKey(0)
    k_x, k_p = jax.random.split(key)

    in_channels, hidden_channels, out_channels, final_class = 96, 128, 64, 4
    batch = 16                                    # exercises a 2-step grid (tm=8)

    x = jax.random.normal(k_x, (batch, in_channels), jnp.float32)
    params = init_params(k_p, in_channels, hidden_channels, out_channels,
                         final_class)

    logits, feature = icon_embedding_fc_forward(x, params)
    jax.block_until_ready((logits, feature))

    assert logits.shape == (batch, final_class)
    assert feature.shape == (batch, out_channels)

    # Tight check vs a reference that mirrors the kernel's folding + bf16 cast.
    rl, rf = _reference_folded_bf16(x, params)
    assert jnp.allclose(logits, rl, atol=1e-4, rtol=1e-4)
    assert jnp.allclose(feature, rf, atol=1e-4, rtol=1e-4)

    # Module-semantics check vs the unfolded f32 reference (bf16 => looser tol).
    ml, mf = _reference_module(x, params)
    assert jnp.allclose(logits, ml, atol=2e-2, rtol=2e-2)
    assert jnp.allclose(feature, mf, atol=2e-2, rtol=2e-2)

    print("KERNEL_OK")
</pallas_src>

<mosaic_0001>
module attributes {stable_mosaic.version = 11 : i64} {
  func.func @_icon_fc_kernel(%arg0: i32, %arg1: memref<8x96xf32, #tpu.memory_space<vmem>>, %arg2: memref<96x64xbf16, #tpu.memory_space<vmem>>, %arg3: memref<1x64xf32, #tpu.memory_space<vmem>>, %arg4: memref<64x64xf32, #tpu.memory_space<vmem>>, %arg5: memref<1x64xf32, #tpu.memory_space<vmem>>, %arg6: memref<8x128xf32, #tpu.memory_space<vmem>>) attributes {dimension_semantics = [#tpu.dimension_semantics<parallel>], iteration_bounds = array<i64: 2>, scalar_prefetch = 0 : i64, scratch_operands = 0 : i64, tpu.core_type = #tpu.core_type<tc>, window_params = [{transform_indices = @transform_0, window_bounds = array<i64: 8, 96>}, {pipeline_mode = #tpu.pipeline_mode<synchronous>, transform_indices = @transform_1, window_bounds = array<i64: 96, 64>}, {pipeline_mode = #tpu.pipeline_mode<synchronous>, transform_indices = @transform_2, window_bounds = array<i64: 1, 64>}, {pipeline_mode = #tpu.pipeline_mode<synchronous>, transform_indices = @transform_3, window_bounds = array<i64: 64, 64>}, {pipeline_mode = #tpu.pipeline_mode<synchronous>, transform_indices = @transform_4, window_bounds = array<i64: 1, 64>}, {transform_indices = @transform_5, window_bounds = array<i64: 8, 128>}]} {
    %c0 = arith.constant 0 : index
    %c0_0 = arith.constant 0 : index
    %0 = vector.load %arg1[%c0, %c0_0] : memref<8x96xf32, #tpu.memory_space<vmem>>, vector<8x96xf32>
    %1 = arith.truncf %0 : vector<8x96xf32> to vector<8x96xbf16>
    %c0_1 = arith.constant 0 : index
    %c0_2 = arith.constant 0 : index
    %2 = vector.load %arg2[%c0_1, %c0_2] : memref<96x64xbf16, #tpu.memory_space<vmem>>, vector<96x64xbf16>
    %cst = arith.constant dense<0.000000e+00> : vector<8x64xf32>
    %3 = tpu.matmul %1, %2, %cst {dimension_numbers = #tpu.dot_dimension_numbers<[1], [0], [0], [1], [0, 0, 1, 1], [], []>} : vector<8x96xbf16>, vector<96x64xbf16>, vector<8x64xf32> -> vector<8x64xf32>
    %c0_3 = arith.constant 0 : index
    %c0_4 = arith.constant 0 : index
    %4 = vector.load %arg3[%c0_3, %c0_4] : memref<1x64xf32, #tpu.memory_space<vmem>>, vector<1x64xf32>
    %5 = vector.broadcast %4 : vector<1x64xf32> to vector<8x64xf32>
    %6 = arith.addf %3, %5 : vector<8x64xf32>
    %cst_5 = arith.constant 0.000000e+00 : f32
    %7 = vector.broadcast %cst_5 : f32 to vector<8x64xf32>
    %8 = arith.maximumf %6, %7 : vector<8x64xf32>
    %c0_6 = arith.constant 0 : index
    %c0_7 = arith.constant 0 : index
    %9 = vector.load %arg4[%c0_6, %c0_7] : memref<64x64xf32, #tpu.memory_space<vmem>>, vector<64x64xf32>
    %cst_8 = arith.constant dense<0.000000e+00> : vector<8x64xf32>
    %10 = tpu.matmul %8, %9, %cst_8 {dimension_numbers = #tpu.dot_dimension_numbers<[1], [0], [0], [1], [0, 0, 1, 1], [], []>} : vector<8x64xf32>, vector<64x64xf32>, vector<8x64xf32> -> vector<8x64xf32>
    %c0_9 = arith.constant 0 : index
    %c0_10 = arith.constant 0 : index
    %11 = vector.load %arg5[%c0_9, %c0_10] : memref<1x64xf32, #tpu.memory_space<vmem>>, vector<1x64xf32>
    %12 = vector.broadcast %11 : vector<1x64xf32> to vector<8x64xf32>
    %13 = arith.addf %10, %12 : vector<8x64xf32>
    %14 = tpu.concatenate %8, %13 in 1 : vector<8x64xf32>, vector<8x64xf32> -> vector<8x128xf32>
    %c0_11 = arith.constant 0 : index
    %c0_12 = arith.constant 0 : index
    %15 = vector.load %arg6[%c0_11, %c0_12] : memref<8x128xf32, #tpu.memory_space<vmem>>, vector<8x128xf32>
    tpu.vector_store %arg6[%c0_11, %c0_12], %14 {strides = array<i32>} : memref<8x128xf32, #tpu.memory_space<vmem>>, vector<8x128xf32>,
    return
  }
  func.func @transform_0(%arg0: i32) -> (i32, i32) {
    %c0_i32 = arith.constant 0 : i32
    %c0_i32_0 = arith.constant 0 : i32
    return %arg0, %c0_i32 : i32, i32
  }
  func.func @transform_1(%arg0: i32) -> (i32, i32) {
    %c0_i32 = arith.constant 0 : i32
    %c0_i32_0 = arith.constant 0 : i32
    %c0_i32_1 = arith.constant 0 : i32
    return %c0_i32, %c0_i32_0 : i32, i32
  }
  func.func @transform_2(%arg0: i32) -> (i32, i32) {
    %c0_i32 = arith.constant 0 : i32
    %c0_i32_0 = arith.constant 0 : i32
    %c0_i32_1 = arith.constant 0 : i32
    return %c0_i32, %c0_i32_0 : i32, i32
  }
  func.func @transform_3(%arg0: i32) -> (i32, i32) {
    %c0_i32 = arith.constant 0 : i32
    %c0_i32_0 = arith.constant 0 : i32
    %c0_i32_1 = arith.constant 0 : i32
    return %c0_i32, %c0_i32_0 : i32, i32
  }
  func.func @transform_4(%arg0: i32) -> (i32, i32) {
    %c0_i32 = arith.constant 0 : i32
    %c0_i32_0 = arith.constant 0 : i32
    %c0_i32_1 = arith.constant 0 : i32
    return %c0_i32, %c0_i32_0 : i32, i32
  }
  func.func @transform_5(%arg0: i32) -> (i32, i32) {
    %c0_i32 = arith.constant 0 : i32
    %c0_i32_0 = arith.constant 0 : i32
    return %arg0, %c0_i32 : i32, i32
  }
}

</mosaic_0001>

<bundles_post_ra>
// kernel: tpu_custom_call.1
= control target key start
LH: loop header
LB: loop body
LE: loop exit
PB: predicated region body
PF: predicated region fallthrough
CT: control target
= control target key end

     0   :  { %10 = vsyncpa [#allocation3], 0  ;;  %s872_s0 = inlined_call_operand.vmem [shape: f32[16,96], index: 0, kind: input, shape index: {}]   ;;  %s873_s1 = inlined_call_operand.vmem [shape: bf16[96,64], index: 1, kind: input, shape index: {}]   ;;  %s874_s2 = inlined_call_operand.vmem [shape: f32[1,64], index: 2, kind: input, shape index: {}]   ;;  %s875_s3 = inlined_call_operand.vmem [shape: f32[64,64], index: 3, kind: input, shape index: {}]   ;;  %s876_s4 = inlined_call_operand.vmem [shape: f32[1,64], index: 4, kind: input, shape index: {}]   ;;  %s877_s5 = inlined_call_operand.hbm [shape: f32[16,128], index: 5, kind: output, shape index: {}]  }
   0x1   :  { %12 = vsyncpa [#allocation3 + $0x1], 0  ;;  %s722_s18 = smov 0   ;;  %s724_s19 = smov 0  }
   0x2   :  { %s726_s20 = smov 0   ;;  %s728_s21 = smov 0  }
   0x3 LB: > { %s743_s22 = sadd.s32 4294967295, %s685_s21   ;;  %s491_s23 = sadd.s32 4294967294, %s685_s21   ;;  %s685_s21 = sphi %s728_s21, %s883_s21   ;;  %s681_s20 = sphi %s726_s20, %s882_s20   ;;  %s677_s19 = sphi %s724_s19, %s881_s19   ;;  %s673_s18 = sphi %s722_s18, %s880_s18  }
   0x4   : > { %s747_s24 = sadd.s32 1, %s685_s21   ;;  %s135_s25 = sadd.s32 1, %s681_s20 }
   0x5   : > { %s132_s26 = ssub.s32 %s685_s21, %s747_s24  ;;  %p145_p0 = scmp.ne.s32.totalorder %s681_s20, %s677_s19 }
   0x6   : > { %p133_p1 = scmp.eq.s32.totalorder %s132_s26, 0  ;;  %p146_p2 = scmp.eq.s32.totalorder %s743_s22, 1 }
   0x7   : > { %p151_p3 = scmp.ne.s32.totalorder %s677_s19, %s673_s18  ;;  %p152_p4 = scmp.eq.s32.totalorder %s491_s23, 1 }
   0x8   : > { %s758_s27 = scalar_select %p133_p1, %s681_s20, %s135_s25  }
   0x9   : > { %p760_p5 = por %p146_p2, %p145_p0  ;;  %p764_p6 = por %p152_p4, %p151_p3 }
   0xa   : > { %p494_p7 = scmp.ge.s32.totalorder %s685_s21, 1  ;;  %p189_p8 = scmp.lt.s32.totalorder %s685_s21, 3 }
   0xc   : > { %p190_p9 = pnand %p494_p7, %p189_p8 }
   0xd   : > { %v617_v0 = vld [vmem:[%s873_s1] sm:$0xff] (!%p190_p9)   ;;  %v687_v1 = vmov (!%p190_p9), 0.0   ;;  %v618_v2 = vld [vmem:[%s873_s1 + $0x8] sm:$0xff] (!%p190_p9)   ;;  %vm688_vm0 = vmmov (!%p190_p9), 0   ;;  %p216_p10 = scmp.lt.s32.totalorder (!%p190_p9), %s743_s22, 1  ;;  %v619_v3 = vld [vmem:[%s873_s1 + $0x10] sm:$0xff] (!%p190_p9)  }
   0xe   : > { %193 = sbr.rel (%p190_p9) target bundleno = 598 (0x256), region = 40  ;;  %527 = vmatprep.subr.bf16.mxu0 (!%p190_p9), %v687_v1  ;;  %539 = vmatprep.mubr.msk.bf16.mxu0 (!%p190_p9), %vm688_vm0, %v687_v1  ;;  %v689_v4 = vmov (!%p190_p9), 0.0|0.0   ;;  %v323_v5 = vld [vmem:[%s875_s3] sm:$0xff] (!%p190_p9)  ;;  %v324_v6 = vld [vmem:[%s875_s3 + $0x8] sm:$0xff] (!%p190_p9)  ;;  %v325_v7 = vld [vmem:[%s875_s3 + $0x10] sm:$0xff] (!%p190_p9)  ;;  %vm278_vm1 = vcmask (!%p190_p9), 785408  }
   0xf   : > { %528 = vmatpush3.bf16.msra.mxu0 (!%p190_p9), %v617_v0  ;;  %559 = vmatprep.mubr.msk.f32.mxu1 (!%p190_p9), %vm688_vm0, %v687_v1  ;;  %v563_v8 = vpack.c.bf16 (!%p190_p9), %v324_v6, %v323_v5  ;;  %v326_v9 = vld [vmem:[%s875_s3 + $0x18] sm:$0xff] (!%p190_p9)  ;;  %v327_v12 = vld [vmem:[%s875_s3 + $0x20] sm:$0xff] (!%p190_p9)  ;;  %v328_v13 = vld [vmem:[%s875_s3 + $0x28] sm:$0xff] (!%p190_p9)  ;;  %vm338_vm2 = vcmask (!%p190_p9), 523264   ;;  %s213_s11 = sand.u32 (!%p190_p9), 1, %s677_s19   ;;  %s508_s13 = sshll.u32 (!%p190_p9), %s743_s22, 7 }
  0x10   : > { %529 = vmatprep.subr.bf16.mxu0 (!%p190_p9), %v687_v1  ;;  %562 = vmatprep.subr.bf16.mxu1 (!%p190_p9), %v689_v4  ;;  %v566_v10 = vpack.c.bf16 (!%p190_p9), %v326_v9, %v325_v7  ;;  %v620_v11 = vld [vmem:[%s873_s1 + $0x18] sm:$0xff] (!%p190_p9)   ;;  %v569_v14 = vpack.c.bf16 (!%p190_p9), %v328_v13, %v327_v12  ;;  %v621_v15 = vld [vmem:[%s873_s1 + $0x20] sm:$0xff] (!%p190_p9)   ;;  %v622_v16 = vld [vmem:[%s873_s1 + $0x28] sm:$0xff] (!%p190_p9)   ;;  %s495_s12 = sshll.u32 (!%p190_p9), %s213_s11, 3  ;;  %s829_s23 = scalar_lea.hbm (!%p190_p9), %s877_s5, %s508_s13 }
  0x11   : > { %564 = vmatpush3.bf16.msra.mxu1 (!%p190_p9), %v563_v8  ;;  %v329_v19 = vld [vmem:[%s875_s3 + $0x30] sm:$0xff] (!%p190_p9)  ;;  %v330_v20 = vld [vmem:[%s875_s3 + $0x38] sm:$0xff] (!%p190_p9)  ;;  %v497_v22 = vld [vmem:[%s874_s2] ss:$0 sm:$0xff] (!%p190_p9)  ;;  %s215_s14 = scalar_lea.vmem (!%p190_p9), [#allocation2], %s495_s12 }
  0x12   : > { %565 = vmatprep.subr.bf16.mxu1 (!%p190_p9), %v689_v4  ;;  %v572_v21 = vpack.c.bf16 (!%p190_p9), %v330_v20, %v329_v19  ;;  %v505_v29 = vld [vmem:[%s876_s4] ss:$0 sm:$0xff] (!%p190_p9) }
  0x13   : > { %530 = vmatpush3.bf16.msra.mxu0 (!%p190_p9), %v618_v2 }
  0x14   : > { %531 = vmatprep.subr.bf16.mxu0 (!%p190_p9), %v687_v1 }
  0x15   : > { %s217_s25 = scalar_select %p216_p10, %s743_s22, 1  ;;  %567 = vmatpush3.bf16.msra.mxu1 %v566_v10 }
  0x16   : > { %568 = vmatprep.subr.bf16.mxu1 %v689_v4  ;;  %s691_s22 = smov [#allocation2]  }
  0x17   : > { %532 = vmatpush3.bf16.msra.mxu0 %v619_v3  ;;  %s496_s10 = sshll.u32 %s217_s25, 3  ;;  %s419_s25 = scalar_lea.sflag [#allocation3], %s213_s11 }
  0x18   : > { %533 = vmatprep.subr.bf16.mxu0 %v687_v1  ;;  %s219_s15 = scalar_lea.vmem %s872_s0, %s496_s10  ;;  %s690_s10 = smov 64  }
  0x19   : > { %570 = vmatpush3.bf16.msra.mxu1 %v569_v14  ;;  %v221_v17 = vld [vmem:[%s219_s15] sm:$0xff]  ;;  %s432_s15 = sshll.u32 %s215_s14, 4  ;;  %s627_s30 = sshll.u32 %s691_s22, 4  ;;  %s831_s15 = int_to_ptr.vmem [resolvable:$true] %s432_s15  ;;  %s628_s30 = int_to_ptr.vmem [resolvable:$false] %s627_s30 }
  0x1a   : > { %571 = vmatprep.subr.bf16.mxu1 %v689_v4  ;;  %v222_v18 = vpack.c.bf16 %v221_v17, %v221_v17  ;;  %s623_s26 = scalar_lea.vmem %s831_s15, 128  ;;  %s629_s6 = scalar_lea.vmem %s628_s30, 256 }
  0x1b   : > { %534 = vmatpush3.bf16.msra.mxu0 %v620_v11  ;;  %p624_p11 = scmp.ne.s32.totalorder %s831_s15, %s623_s26  ;;  %p630_p0 = scmp.lt.s32.totalorder %s831_s15, %s628_s30 }
  0x1c   : > { %535 = vmatprep.subr.bf16.mxu0 %v687_v1  ;;  %p631_p1 = scmp.lt.s32.totalorder %s629_s6, %s623_s26 }
  0x1d   : > { %573 = vmatpush3.bf16.msra.mxu1 %v572_v21  ;;  %p625_p12 = pnand %p624_p11, %p760_p5 }
  0x1e   : > { %p632_p2 = por %p631_p1, %p630_p0 }
  0x1f   : > { %536 = vmatpush3.bf16.msra.mxu0 %v621_v15  ;;  %p626_p13 = pneg %p625_p12 }
  0x20   : > { %537 = vmatprep.subr.bf16.mxu0 %v687_v1 }
  0x21   : > { %p633_p3 = pnand %p632_p2, %p626_p13 }
  0x23   : > { %538 = vmatpush3.bf16.msra.mxu0 %v622_v16 }
  0x26   : > { %540 = vmatmul.mubr.msk.bf16.vlgmr.msra.gmra.mrb[0].mxu0 %vm278_vm1, %v222_v18 }
  0xf9   : > { %v316_v23 = vpop.f32.mrb[0].mxu0 }
  0xfa   : > { %v317_v24 = vadd.f32 %v497_v22, %v316_v23  ;;  %v541_v25 = vpop.f32.mrb[1].mxu0 }
  0xfb   : > { %v319_v26 = vpop.f32.mrb[2].mxu0 }
  0xfc   : > { %v322_v27 = vmax.f32 %v317_v24, 0.0  ;;  %v542_v28 = vpop.f32.mrb[3].mxu0 }
  0xfe   : > { %560 = vmatmul.mubr.msk.f32.vlgmr.msra.gmra.mrb[0].mxu1 %vm338_vm2, %v322_v27 }
 0x1d1   : > { %v408_v30 = vpop.f32.mrb[0].mxu1 }
 0x1d2   : > { %v409_v31 = vadd.f32 %v505_v29, %v408_v30  ;;  %v561_v32 = vpop.f32.mrb[1].mxu1 }
 0x1d4   : > { %413 = vrot.lane.b32.xlu0 %v409_v31, %s690_s10 }
 0x246   : > { %v414_v33 = vpop.permute.xlu0 %413 }
 0x247   : > { %v416_v34 = vsel %vm338_vm2, %v322_v27, %v414_v33 }
 0x248   : > { %417 = vst [vmem:[%s215_s14] sm:$0xff] %v416_v34 }
 0x249   : > { %636 = shalt.err (!%p633_p3)
}
 0x24a   : > { %s637_s7 = scalar_lea.hbm %s829_s23, 128  ;;  %s641_s10 = scalar_lea.hbm %s877_s5, 256 }
 0x24b   : > { %p638_p4 = scmp.ne.s32.totalorder %s829_s23, %s637_s7  ;;  %p642_p9 = scmp.lt.u32.totalorder %s829_s23, %s877_s5 }
 0x24c   : > { %p643_p10 = scmp.lt.u32.totalorder %s641_s10, %s637_s7  ;;  %p645_p12 = scmp.lt.u32.totalorder %s637_s7, %s829_s23 }
 0x24d   : > { %p639_p7 = pnand %p638_p4, %p760_p5 }
 0x24e   : > { %p644_p11 = por %p643_p10, %p642_p9 }
 0x24f   : > { %p640_p8 = pneg %p639_p7 }
 0x250   : > { %p646_p13 = por %p645_p12, %p644_p11 }
 0x252   : > { %p647_p0 = pnand %p646_p13, %p640_p8 }
 0x254   : > { %650 = shalt.err (!%p647_p0)
}
 0x255   : > { %574 = dma.vmem_to_hbm [thread:$0]  (%p760_p5), %s831_s15, 128, %s829_s23, %s419_s25  }
 0x256 PF: > { %p580_p1 = scmp.ge.s32.totalorder %s685_s21, 2  ;;  %s444_s13 = sand.u32 1, %s673_s18  }
 0x257   : > { %s445_s14 = scalar_lea.sflag [#allocation3], %s444_s13 }
 0x258   : > { %p577_p2 = pnand %p580_p1, %p764_p6 }
 0x25a   : > { %668 = dma.done.wait (!%p577_p2), %s445_s14, 128  }
 0x25b   : > { %670 = vsyncadd (!%p577_p2), %s445_s14, 4294967168  ;;  %p15_p3 = scmp.ge.s32.totalorder %s747_s24, 4   ;;  %s880_s18 = smov %s677_s19 }
 0x25c   : > { %s881_s19 = smov %s681_s20  ;;  %s882_s20 = smov %s758_s27 }
 0x25d   : > { %s883_s21 = smov %s747_s24  ;;  %17 = sbr.rel (!%p15_p3) target bundleno = 3 (0x3), region = 75 }
 0x264   :  { %450 = vsyncpa [#allocation3], 1 }
 0x265   :  { %452 = vsyncpa [#allocation3 + $0x1], 1 }

</bundles_post_ra>
